<compile_context>
chip_gen: v7x
topology: tpu7x:2x2x1
jax: 0.10.0
libtpu: 0.0.40
codegen_flags: <defaults>
</compile_context>

<pallas_src>
import jax
import jax.numpy as jnp
from jax import lax
from jax.experimental import pallas as pl
from jax.experimental.pallas import tpu as pltpu

# ---- static model dims (small, synthetic) ----
B = 2        # batch
S = 16       # sequence length
E = 32       # embedding dim (GPT2 wte width, shrunk)
VOCAB = 100  # vocab size
O = 256      # conv output channels (as in the module)
H = 32       # fc hidden
K = 3        # conv kernel size

BS = B * S                 # 32 flattened (batch, seq) rows
KV = K * VOCAB             # 300 combined (tap, token) indices
KV_PAD = 384               # padded to a multiple of 128 lanes


def secondary_learner_kernel(comb_ref, g_ref, whead_ref, btot_ref, out_ref):
    # comb_ref : (K, BS, 1) int32  combined indices k*VOCAB + token, -1 = conv zero pad
    # g_ref    : (KV_PAD, O) f32   folded gather+conv weight  G[k*V+v] = wte[v] @ w_conv[k]
    # whead_ref: (O, 1)      f32   folded fc head  w1 @ w2 @ w3
    # btot_ref : (1, 1)      f32   folded bias     b_conv @ W_head + ((b1@w2 + b2)@w3 + b3)
    # out_ref  : (B, 1)      f32

    # One-hot selector over the combined (tap, token) axis; -1 sentinels never match.
    iota = lax.broadcasted_iota(jnp.int32, (BS, KV_PAD), 1)
    hit = iota == comb_ref[0]                       # (BS, KV_PAD) bool
    for k in range(1, K):                           # static unroll, k-blocks are disjoint
        hit = hit | (iota == comb_ref[k])
    onehot = hit.astype(jnp.float32)

    # Embedding gather + padding + Conv1d(E->O, k=3, pad=1) as a single MXU matmul.
    acc = jnp.dot(onehot, g_ref[...],
                  preferred_element_type=jnp.float32)          # (BS, O)

    # max-pool over the sequence axis (torch.max(..., 2)[0]); tile-aligned reshape.
    pooled = jnp.max(acc.reshape(B, S, O), axis=1)             # (B, O)

    # Folded fc head (Linear->Dropout(id)->Linear->Linear collapsed to one matvec).
    q = jnp.dot(pooled, whead_ref[...],
                preferred_element_type=jnp.float32) + btot_ref[...]
    out_ref[...] = q                                           # (B, 1)


def fold_params(params):
    """Trace/init-time algebraic folding of the weights (data-independent)."""
    hp = jax.lax.Precision.HIGHEST
    # G[k*VOCAB + v, o] = sum_e wte[v, e] * w_conv[k, e, o]
    g = jnp.einsum("ve,keo->kvo", params["wte"], params["w_conv"],
                   precision=hp).reshape(KV, O)
    g = jnp.pad(g, ((0, KV_PAD - KV), (0, 0)))                 # zero rows; never selected
    # fc head has no nonlinearity (dropout = identity at inference) -> single matvec.
    w_head = jnp.dot(jnp.dot(params["w1"], params["w2"], precision=hp),
                     params["w3"], precision=hp)               # (O, 1)
    b_head = jnp.dot(jnp.dot(params["b1"], params["w2"], precision=hp)
                     + params["b2"], params["w3"], precision=hp) + params["b3"]
    # conv bias is constant over S, so it commutes with the max-pool -> fold it too.
    b_total = jnp.dot(params["b_conv"], w_head, precision=hp) + b_head   # (1, 1)
    return {"g": g, "w_head": w_head, "b_total": b_total}


def secondary_learner_forward(context, folded):
    """context: int32 [B, 1, S] token ids (matches the .squeeze(1) in forward)."""
    ids = context[:, 0, :]                                     # (B, S)
    # Conv1d padding=1 -> sentinel -1 taps at the sequence edges (select a zero row).
    ids_pad = jnp.pad(ids, ((0, 0), (1, 1)), constant_values=-1)     # (B, S+2)
    taps = jnp.stack([ids_pad[:, k:k + S] for k in range(K)], axis=0)  # (K, B, S)
    offs = (jnp.arange(K, dtype=jnp.int32) * VOCAB).reshape(K, 1, 1)
    comb = jnp.where(taps >= 0, taps + offs, -1).astype(jnp.int32)
    comb = comb.reshape(K, BS, 1)

    vmem = pl.BlockSpec(memory_space=pltpu.MemorySpace.VMEM)
    out = pl.pallas_call(
        secondary_learner_kernel,
        out_shape=jax.ShapeDtypeStruct((B, 1), jnp.float32),
        in_specs=[vmem, vmem, vmem, vmem],
        out_specs=vmem,
    )(comb, folded["g"], folded["w_head"], folded["b_total"])
    return out[:, 0]                                           # squeeze(1) -> (B,)


def init_params(key):
    ks = jax.random.split(key, 9)
    scale = 0.05
    return {
        "wte":    jax.random.normal(ks[0], (VOCAB, E), jnp.float32) * scale,
        "w_conv": jax.random.normal(ks[1], (K, E, O), jnp.float32) * scale,
        "b_conv": jax.random.normal(ks[2], (1, O), jnp.float32) * scale,
        "w1":     jax.random.normal(ks[3], (O, H), jnp.float32) * scale,
        "b1":     jax.random.normal(ks[4], (1, H), jnp.float32) * scale,
        "w2":     jax.random.normal(ks[5], (H, H), jnp.float32) * scale,
        "b2":     jax.random.normal(ks[6], (1, H), jnp.float32) * scale,
        "w3":     jax.random.normal(ks[7], (H, 1), jnp.float32) * scale,
        "b3":     jax.random.normal(ks[8], (1, 1), jnp.float32) * scale,
    }


def reference_forward(context, params):
    """Pure-JAX reference mirroring the PyTorch forward layer-by-layer."""
    hp = jax.lax.Precision.HIGHEST
    emb = params["wte"][context[:, 0, :]]                      # (B, S, E)
    emb_pad = jnp.pad(emb, ((0, 0), (1, 1), (0, 0)))
    acc = jnp.zeros((B, S, O), jnp.float32)
    for k in range(K):
        acc = acc + jnp.einsum("bse,eo->bso", emb_pad[:, k:k + S, :],
                               params["w_conv"][k], precision=hp)
    acc = acc + params["b_conv"][None]
    pooled = jnp.max(acc, axis=1)                              # (B, O)
    h = jnp.dot(pooled, params["w1"], precision=hp) + params["b1"]
    h = jnp.dot(h, params["w2"], precision=hp) + params["b2"]  # dropout = identity
    q = jnp.dot(h, params["w3"], precision=hp) + params["b3"]
    return q[:, 0]


if __name__ == "__main__":
    key = jax.random.PRNGKey(0)
    pkey, ckey = jax.random.split(key)
    params = init_params(pkey)
    folded = fold_params(params)                               # one-time weight folding
    # context: [B, 1, S] int token ids (forward squeezes dim 1)
    context = jax.random.randint(ckey, (B, 1, S), 0, VOCAB, dtype=jnp.int32)

    fwd = jax.jit(secondary_learner_forward)
    out = jax.block_until_ready(fwd(context, folded))

    ref = reference_forward(context, params)
    assert out.shape == (B,)
    assert jnp.allclose(out, ref, atol=1e-5, rtol=1e-5), (out, ref)
    print("KERNEL_OK")
</pallas_src>

<mosaic_0001>
module attributes {stable_mosaic.version = 11 : i64} {
  func.func @secondary_learner_kernel(%arg0: memref<3x32x1xi32, #tpu.memory_space<vmem>>, %arg1: memref<384x256xf32, #tpu.memory_space<vmem>>, %arg2: memref<256x1xf32, #tpu.memory_space<vmem>>, %arg3: memref<1x1xf32, #tpu.memory_space<vmem>>, %arg4: memref<2x1xf32, #tpu.memory_space<vmem>>) attributes {dimension_semantics = [], scalar_prefetch = 0 : i64, scratch_operands = 0 : i64, tpu.core_type = #tpu.core_type<tc>} {
    %0 = tpu.iota {dimensions = array<i32: 1>} : vector<32x384xi32>
    %c0 = arith.constant 0 : index
    %c0_0 = arith.constant 0 : index
    %c0_1 = arith.constant 0 : index
    %1 = vector.load %arg0[%c0, %c0_0, %c0_1] : memref<3x32x1xi32, #tpu.memory_space<vmem>>, vector<1x32x1xi32>
    %2 = vector.shape_cast %1 : vector<1x32x1xi32> to vector<32x1xi32>
    %3 = vector.broadcast %2 : vector<32x1xi32> to vector<32x384xi32>
    %4 = arith.cmpi eq, %0, %3 : vector<32x384xi32>
    %c1 = arith.constant 1 : index
    %c0_2 = arith.constant 0 : index
    %c0_3 = arith.constant 0 : index
    %5 = vector.load %arg0[%c1, %c0_2, %c0_3] : memref<3x32x1xi32, #tpu.memory_space<vmem>>, vector<1x32x1xi32>
    %6 = vector.shape_cast %5 : vector<1x32x1xi32> to vector<32x1xi32>
    %7 = vector.broadcast %6 : vector<32x1xi32> to vector<32x384xi32>
    %8 = arith.cmpi eq, %0, %7 : vector<32x384xi32>
    %9 = arith.ori %4, %8 : vector<32x384xi1>
    %c2 = arith.constant 2 : index
    %c0_4 = arith.constant 0 : index
    %c0_5 = arith.constant 0 : index
    %10 = vector.load %arg0[%c2, %c0_4, %c0_5] : memref<3x32x1xi32, #tpu.memory_space<vmem>>, vector<1x32x1xi32>
    %11 = vector.shape_cast %10 : vector<1x32x1xi32> to vector<32x1xi32>
    %12 = vector.broadcast %11 : vector<32x1xi32> to vector<32x384xi32>
    %13 = arith.cmpi eq, %0, %12 : vector<32x384xi32>
    %14 = arith.ori %9, %13 : vector<32x384xi1>
    %15 = arith.extui %14 : vector<32x384xi1> to vector<32x384xi32>
    %16 = arith.sitofp %15 : vector<32x384xi32> to vector<32x384xf32>
    %c0_6 = arith.constant 0 : index
    %c0_7 = arith.constant 0 : index
    %17 = vector.load %arg1[%c0_6, %c0_7] : memref<384x256xf32, #tpu.memory_space<vmem>>, vector<384x256xf32>
    %cst = arith.constant dense<0.000000e+00> : vector<32x256xf32>
    %18 = tpu.matmul %16, %17, %cst {dimension_numbers = #tpu.dot_dimension_numbers<[1], [0], [0], [1], [0, 0, 1, 1], [], []>} : vector<32x384xf32>, vector<384x256xf32>, vector<32x256xf32> -> vector<32x256xf32>
    %19 = vector.shape_cast %18 : vector<32x256xf32> to vector<2x16x256xf32>
    %cst_8 = arith.constant dense<0xFF800000> : vector<2x256xf32>
    %20 = vector.multi_reduction <maximumf>, %19, %cst_8 [1] : vector<2x16x256xf32> to vector<2x256xf32>
    %c0_9 = arith.constant 0 : index
    %c0_10 = arith.constant 0 : index
    %21 = vector.load %arg2[%c0_9, %c0_10] : memref<256x1xf32, #tpu.memory_space<vmem>>, vector<256x1xf32>
    %cst_11 = arith.constant dense<0.000000e+00> : vector<2x1xf32>
    %22 = tpu.matmul %20, %21, %cst_11 {dimension_numbers = #tpu.dot_dimension_numbers<[1], [0], [0], [1], [0, 0, 1, 1], [], []>} : vector<2x256xf32>, vector<256x1xf32>, vector<2x1xf32> -> vector<2x1xf32>
    %c0_12 = arith.constant 0 : index
    %c0_13 = arith.constant 0 : index
    %23 = vector.load %arg3[%c0_12, %c0_13] : memref<1x1xf32, #tpu.memory_space<vmem>>, vector<1x1xf32>
    %24 = vector.broadcast %23 : vector<1x1xf32> to vector<2x1xf32>
    %25 = arith.addf %22, %24 : vector<2x1xf32>
    %c0_14 = arith.constant 0 : index
    %c0_15 = arith.constant 0 : index
    %26 = vector.load %arg4[%c0_14, %c0_15] : memref<2x1xf32, #tpu.memory_space<vmem>>, vector<2x1xf32>
    tpu.vector_store %arg4[%c0_14, %c0_15], %25 {strides = array<i32>} : memref<2x1xf32, #tpu.memory_space<vmem>>, vector<2x1xf32>,
    return
  }
}

</mosaic_0001>

<bundles_post_ra>
// kernel: secondary_learner_forward.1
= control target key start
LH: loop header
LB: loop body
LE: loop exit
PB: predicated region body
PF: predicated region fallthrough
CT: control target
= control target key end

     0   :  { %s1083_s0 = inlined_call_operand.vmem [shape: s32[3,32,1], index: 0, kind: input, shape index: {}]   ;;  %s1084_s1 = inlined_call_operand.hbm [shape: f32[384,256], index: 1, kind: input, shape index: {}]   ;;  %s1085_s2 = inlined_call_operand.vmem [shape: f32[256,1], index: 2, kind: input, shape index: {}]   ;;  %s1086_s3 = inlined_call_operand.<no memory space> [shape: f32[1,1], index: 3, kind: input, shape index: {}]   ;;  %s1087_s4 = inlined_call_operand.vmem [shape: f32[2,1], index: 4, kind: output, shape index: {}]  }
   0x1   :  { %v9_v0 = vstv %s1086_s3 }
   0x2   :  { %10 = vst [vmem:[#allocation2] sm:$0x1] %v9_v0 }
   0x3   :  { %11 = vsyncpa [#allocation4], 0  ;;  %s834_s17 = smov [#allocation3]   ;;  %s810_s21 = scalar_lea.hbm %s1084_s1, 12288 }
   0x4   :  { %s19_s18 = sshll.u32 %s834_s17, 4  ;;  %p811_p0 = scmp.ne.s32.totalorder %s1084_s1, %s810_s21  ;;  %s20_s18 = int_to_ptr.vmem [resolvable:$true] %s19_s18 }
   0x5   :  { %p814_p1 = scmp.lt.u32.totalorder %s810_s21, %s1084_s1 }
   0x7   :  { %p816_p2 = pnand %p814_p1, %p811_p0 }
   0x9   :  { %819 = shalt.err (!%p816_p2)
}
   0xa   :  { %s820_s3 = scalar_lea.vmem %s20_s18, 12288  ;;  %p825_p4 = scmp.lt.s32.totalorder %s20_s18, %s20_s18 }
   0xb   :  { %p821_p3 = scmp.ne.s32.totalorder %s20_s18, %s820_s3  ;;  %p826_p5 = scmp.lt.s32.totalorder %s820_s3, %s820_s3 }
   0xd   :  { %p827_p6 = por %p826_p5, %p825_p4 }
   0xf   :  { %p828_p7 = pnand %p827_p6, %p821_p3 }
  0x11   :  { %831 = shalt.err (!%p828_p7)
}
  0x12   :  { %s835_s26 = smov 256   ;;  %s836_s27 = smov 16  }
  0x13   :  { %25 = dma.hbm_to_vmem [thread:$0]  %s1084_s1, 12288, %s20_s18, [#allocation4], %s835_s26, %s835_s26, %s836_s27  }
  0x14   :  { %832 = dma.done.wait [#allocation4], 12288  }
  0x15   :  { %833 = vsyncadd [#allocation4], 4294955008  ;;  %v837_v1 = vmov 0   ;;  %v602_v2 = vld [vmem:[%s1083_s0 + $0x40] sm:$0xff]  ;;  %v38_v4 = vld [vmem:[%s1083_s0 + $0x8] sm:$0xff]  ;;  %v838_v21 = vmov 0.0  }
  0x16   :  { %809 = vset.pattern.permute.xlu1 %v837_v1  ;;  %808 = vset.pattern.permute.xlu0 %v837_v1  ;;  %v37_v3 = vld [vmem:[%s1083_s0] sm:$0xff]  ;;  %v603_v6 = vld [vmem:[%s1083_s0 + $0x48] sm:$0xff]  ;;  %v173_v11 = vld [vmem:[#allocation3 + $0x10] sm:$0xff] }
  0x17   :  { %112 = vperm.xlu1 %809, %v602_v2   ;;  %42 = vperm.xlu0 %808, %v37_v3   ;;  %v598_v5 = vld [vmem:[%s1083_s0 + $0x20] sm:$0xff]  ;;  %v172_v7 = vld [vmem:[#allocation3 + $0x8] sm:$0xff]  ;;  %v177_v18 = vld [vmem:[#allocation3 + $0x30] sm:$0xff] }
  0x18   :  { %v174_v8 = vld [vmem:[#allocation3 + $0x18] sm:$0xff]  ;;  %v171_v9 = vld [vmem:[#allocation3] sm:$0xff]  ;;  %v176_v12 = vld [vmem:[#allocation3 + $0x28] sm:$0xff]  ;;  %420 = vmatprep.mubr.f32.mxu1 %v838_v21 }
  0x19   :  { %v666_v10 = vpack.c.bf16 %v174_v8, %v172_v7  ;;  %v178_v13 = vld [vmem:[#allocation3 + $0x38] sm:$0xff]  ;;  %v599_v14 = vld [vmem:[%s1083_s0 + $0x28] sm:$0xff]  ;;  %v668_v15 = vpack.c.bf16 %v173_v11, %v171_v9  ;;  %v181_v24 = vld [vmem:[#allocation3 + $0x50] sm:$0xff] }
  0x1a   :  { %v670_v16 = vpack.c.bf16 %v178_v13, %v176_v12  ;;  %v175_v17 = vld [vmem:[#allocation3 + $0x20] sm:$0xff]  ;;  %v180_v19 = vld [vmem:[#allocation3 + $0x48] sm:$0xff]  ;;  %v182_v20 = vld [vmem:[#allocation3 + $0x58] sm:$0xff] }
  0x1b   :  { %45 = vperm.xlu1 %809, %v38_v4   ;;  %71 = vperm.xlu0 %808, %v598_v5   ;;  %v672_v22 = vpack.c.bf16 %v177_v18, %v175_v17  ;;  %v179_v23 = vld [vmem:[#allocation3 + $0x40] sm:$0xff]  ;;  %v600_v25 = vld [vmem:[%s1083_s0 + $0x30] sm:$0xff]  ;;  %v674_v27 = vpack.c.bf16 %v182_v20, %v180_v19  ;;  %v186_v29 = vld [vmem:[#allocation3 + $0x78] sm:$0xff] }
  0x1c   :  { %667 = vmatprep.subr.bf16.mxu0 %v666_v10  ;;  %v39_v26 = vld [vmem:[%s1083_s0 + $0x10] sm:$0xff]  ;;  %v676_v30 = vpack.c.bf16 %v181_v24, %v179_v23  ;;  %v183_v31 = vld [vmem:[#allocation3 + $0x60] sm:$0xff]  ;;  %v40_v33 = vld [vmem:[%s1083_s0 + $0x18] sm:$0xff] }
  0x1d   :  { %669 = vmatpush1.bf16.msra.mxu0 %v668_v15  ;;  %v184_v28 = vld [vmem:[#allocation3 + $0x68] sm:$0xff]  ;;  %v185_v32 = vld [vmem:[#allocation3 + $0x70] sm:$0xff]  ;;  %v190_v38 = vld [vmem:[#allocation3 + $0x98] sm:$0xff] }
  0x1e   :  { %671 = vmatprep.subr.bf16.mxu0 %v670_v16  ;;  %v604_v34 = vld [vmem:[%s1083_s0 + $0x50] sm:$0xff]  ;;  %v678_v35 = vpack.c.bf16 %v186_v29, %v184_v28  ;;  %v238_v39 = vld [vmem:[#allocation3 + $0x218] sm:$0xff]  ;;  %v680_v42 = vpack.c.bf16 %v185_v32, %v183_v31  ;;  %v187_v43 = vld [vmem:[#allocation3 + $0x80] sm:$0xff] }
  0x1f   :  { %115 = vperm.xlu1 %809, %v603_v6   ;;  %74 = vperm.xlu0 %808, %v599_v14   ;;  %v236_v36 = vld [vmem:[#allocation3 + $0x208] sm:$0xff]  ;;  %v605_v40 = vld [vmem:[%s1083_s0 + $0x58] sm:$0xff]  ;;  %v235_v45 = vld [vmem:[#allocation3 + $0x200] sm:$0xff] }
  0x20   :  { %v188_v37 = vld [vmem:[#allocation3 + $0x88] sm:$0xff]  ;;  %v601_v41 = vld [vmem:[%s1083_s0 + $0x38] sm:$0xff]  ;;  %v730_v44 = vpack.c.bf16 %v238_v39, %v236_v36  ;;  %v239_v55 = vld [vmem:[#allocation3 + $0x220] sm:$0xff] }
  0x21   :  { %673 = vmatpush1.bf16.msra.mxu0 %v672_v22  ;;  %v237_v46 = vld [vmem:[#allocation3 + $0x210] sm:$0xff]  ;;  %v240_v49 = vld [vmem:[#allocation3 + $0x228] sm:$0xff]  ;;  %v242_v50 = vld [vmem:[#allocation3 + $0x238] sm:$0xff]  ;;  %v682_v51 = vpack.c.bf16 %v190_v38, %v188_v37 }
  0x22   :  { %675 = vmatprep.subr.bf16.mxu0 %v674_v27  ;;  %v189_v47 = vld [vmem:[#allocation3 + $0x90] sm:$0xff]  ;;  %v732_v48 = vpack.c.bf16 %v237_v46, %v235_v45  ;;  %v192_v52 = vld [vmem:[#allocation3 + $0xa8] sm:$0xff]  ;;  %v194_v53 = vld [vmem:[#allocation3 + $0xb8] sm:$0xff]  ;;  %731 = vmatprep.subr.bf16.mxu1 %v730_v44  ;;  %v734_v54 = vpack.c.bf16 %v242_v50, %v240_v49 }
  0x23   :  { %77 = vperm.xlu1 %809, %v600_v25   ;;  %48 = vperm.xlu0 %808, %v39_v26   ;;  %v241_v56 = vld [vmem:[#allocation3 + $0x230] sm:$0xff]  ;;  %v684_v57 = vpack.c.bf16 %v189_v47, %v187_v43  ;;  %v191_v58 = vld [vmem:[#allocation3 + $0xa0] sm:$0xff]  ;;  %v244_v60 = vld [vmem:[#allocation3 + $0x248] sm:$0xff]  ;;  %v686_v62 = vpack.c.bf16 %v194_v53, %v192_v52 }
  0x24   :  { %733 = vmatpush1.bf16.msra.mxu1 %v732_v48  ;;  %v736_v59 = vpack.c.bf16 %v241_v56, %v239_v55  ;;  %v246_v61 = vld [vmem:[#allocation3 + $0x258] sm:$0xff]  ;;  %v193_v63 = vld [vmem:[#allocation3 + $0xb0] sm:$0xff]  ;;  %v243_v1 = vld [vmem:[#allocation3 + $0x240] sm:$0xff] }
  0x25   :  { %677 = vmatpush1.bf16.msra.mxu0 %v676_v30  ;;  %735 = vmatprep.subr.bf16.mxu1 %v734_v54  ;;  %v738_v0 = vpack.c.bf16 %v246_v61, %v244_v60  ;;  %v245_v2 = vld [vmem:[#allocation3 + $0x250] sm:$0xff]  ;;  %v196_v3 = vld [vmem:[#allocation3 + $0xc8] sm:$0xff]  ;;  %v198_v4 = vld [vmem:[#allocation3 + $0xd8] sm:$0xff]  ;;  %v688_v8 = vpack.c.bf16 %v193_v63, %v191_v58 }
  0x26   :  { %679 = vmatprep.subr.bf16.mxu0 %v678_v35  ;;  %v248_v5 = vld [vmem:[#allocation3 + $0x268] sm:$0xff]  ;;  %v740_v6 = vpack.c.bf16 %v245_v2, %v243_v1  ;;  %v250_v7 = vld [vmem:[#allocation3 + $0x278] sm:$0xff]  ;;  %v195_v9 = vld [vmem:[#allocation3 + $0xc0] sm:$0xff]  ;;  %v690_v13 = vpack.c.bf16 %v198_v4, %v196_v3 }
  0x27   :  { %51 = vperm.xlu1 %809, %v40_v33   ;;  %118 = vperm.xlu0 %808, %v604_v34   ;;  %v742_v10 = vpack.c.bf16 %v250_v7, %v248_v5  ;;  %v247_v11 = vld [vmem:[#allocation3 + $0x260] sm:$0xff]  ;;  %v249_v12 = vld [vmem:[#allocation3 + $0x270] sm:$0xff]  ;;  %v252_v15 = vld [vmem:[#allocation3 + $0x288] sm:$0xff] }
  0x28   :  { %737 = vmatpush1.bf16.msra.mxu1 %v736_v59  ;;  %v197_v14 = vld [vmem:[#allocation3 + $0xd0] sm:$0xff]  ;;  %v254_v16 = vld [vmem:[#allocation3 + $0x298] sm:$0xff]  ;;  %v200_v17 = vld [vmem:[#allocation3 + $0xe8] sm:$0xff]  ;;  %v744_v19 = vpack.c.bf16 %v249_v12, %v247_v11 }
  0x29   :  { %681 = vmatpush1.bf16.msra.mxu0 %v680_v42  ;;  %739 = vmatprep.subr.bf16.mxu1 %v738_v0  ;;  %v202_v18 = vld [vmem:[#allocation3 + $0xf8] sm:$0xff]  ;;  %v692_v20 = vpack.c.bf16 %v197_v14, %v195_v9  ;;  %v199_v22 = vld [vmem:[#allocation3 + $0xe0] sm:$0xff]  ;;  %v746_v23 = vpack.c.bf16 %v254_v16, %v252_v15  ;;  %v253_v25 = vld [vmem:[#allocation3 + $0x290] sm:$0xff] }
  0x2a   :  { %683 = vmatprep.subr.bf16.mxu0 %v682_v51  ;;  %v251_v24 = vld [vmem:[#allocation3 + $0x280] sm:$0xff]  ;;  %v694_v26 = vpack.c.bf16 %v202_v18, %v200_v17  ;;  %v201_v27 = vld [vmem:[#allocation3 + $0xf0] sm:$0xff]  ;;  %v256_v28 = vld [vmem:[#allocation3 + $0x2a8] sm:$0xff] }
  0x2b   :  { %121 = vperm.xlu1 %809, %v605_v40   ;;  %80 = vperm.xlu0 %808, %v601_v41   ;;  %v258_v29 = vld [vmem:[#allocation3 + $0x2b8] sm:$0xff]  ;;  %v204_v30 = vld [vmem:[#allocation3 + $0x108] sm:$0xff]  ;;  %v748_v32 = vpack.c.bf16 %v253_v25, %v251_v24  ;;  %v696_v33 = vpack.c.bf16 %v201_v27, %v199_v22  ;;  %v203_v34 = vld [vmem:[#allocation3 + $0x100] sm:$0xff] }
  0x2c   :  { %741 = vmatpush1.bf16.msra.mxu1 %v740_v6  ;;  %v206_v31 = vld [vmem:[#allocation3 + $0x118] sm:$0xff]  ;;  %v750_v35 = vpack.c.bf16 %v258_v29, %v256_v28  ;;  %v255_v36 = vld [vmem:[#allocation3 + $0x2a0] sm:$0xff]  ;;  %v257_v37 = vld [vmem:[#allocation3 + $0x2b0] sm:$0xff] }
  0x2d   :  { %685 = vmatpush1.bf16.msra.mxu0 %v684_v57  ;;  %743 = vmatprep.subr.bf16.mxu1 %v742_v10  ;;  %v698_v38 = vpack.c.bf16 %v206_v31, %v204_v30  ;;  %v205_v39 = vld [vmem:[#allocation3 + $0x110] sm:$0xff]  ;;  %v260_v40 = vld [vmem:[#allocation3 + $0x2c8] sm:$0xff]  ;;  %v262_v41 = vld [vmem:[#allocation3 + $0x2d8] sm:$0xff]  ;;  %v752_v44 = vpack.c.bf16 %v257_v37, %v255_v36 }
  0x2e   :  { %687 = vmatprep.subr.bf16.mxu0 %v686_v62  ;;  %v208_v42 = vld [vmem:[#allocation3 + $0x128] sm:$0xff]  ;;  %v210_v43 = vld [vmem:[#allocation3 + $0x138] sm:$0xff]  ;;  %v700_v45 = vpack.c.bf16 %v205_v39, %v203_v34  ;;  %v207_v46 = vld [vmem:[#allocation3 + $0x120] sm:$0xff]  ;;  %v754_v47 = vpack.c.bf16 %v262_v41, %v260_v40 }
  0x2f   :  { %v259_v48 = vld [vmem:[#allocation3 + $0x2c0] sm:$0xff]  ;;  %v261_v49 = vld [vmem:[#allocation3 + $0x2d0] sm:$0xff]  ;;  %v702_v50 = vpack.c.bf16 %v210_v43, %v208_v42  ;;  %v264_v52 = vld [vmem:[#allocation3 + $0x2e8] sm:$0xff] }
  0x30   :  { %745 = vmatpush1.bf16.msra.mxu1 %v744_v19  ;;  %v209_v51 = vld [vmem:[#allocation3 + $0x130] sm:$0xff]  ;;  %v266_v53 = vld [vmem:[#allocation3 + $0x2f8] sm:$0xff]  ;;  %v212_v54 = vld [vmem:[#allocation3 + $0x148] sm:$0xff]  ;;  %v756_v56 = vpack.c.bf16 %v261_v49, %v259_v48 }
  0x31   :  { %689 = vmatpush1.bf16.msra.mxu0 %v688_v8  ;;  %747 = vmatprep.subr.bf16.mxu1 %v746_v23  ;;  %v214_v55 = vld [vmem:[#allocation3 + $0x158] sm:$0xff]  ;;  %v704_v57 = vpack.c.bf16 %v209_v51, %v207_v46  ;;  %v758_v58 = vpack.c.bf16 %v266_v53, %v264_v52  ;;  %v263_v59 = vld [vmem:[#allocation3 + $0x2e0] sm:$0xff]  ;;  %v265_v60 = vld [vmem:[#allocation3 + $0x2f0] sm:$0xff] }
  0x32   :  { %691 = vmatprep.subr.bf16.mxu0 %v690_v13  ;;  %v706_v61 = vpack.c.bf16 %v214_v55, %v212_v54  ;;  %v211_v62 = vld [vmem:[#allocation3 + $0x140] sm:$0xff]  ;;  %v213_v63 = vld [vmem:[#allocation3 + $0x150] sm:$0xff]  ;;  %v216_v0 = vld [vmem:[#allocation3 + $0x168] sm:$0xff]  ;;  %v760_v2 = vpack.c.bf16 %v265_v60, %v263_v59 }
  0x33   :  { %v218_v1 = vld [vmem:[#allocation3 + $0x178] sm:$0xff]  ;;  %v708_v3 = vpack.c.bf16 %v213_v63, %v211_v62  ;;  %v215_v5 = vld [vmem:[#allocation3 + $0x160] sm:$0xff]  ;;  %v217_v6 = vld [vmem:[#allocation3 + $0x170] sm:$0xff] }
  0x34   :  { %749 = vmatpush1.bf16.msra.mxu1 %v748_v32  ;;  %v710_v4 = vpack.c.bf16 %v218_v1, %v216_v0  ;;  %v220_v7 = vld [vmem:[#allocation3 + $0x188] sm:$0xff]  ;;  %v222_v8 = vld [vmem:[#allocation3 + $0x198] sm:$0xff]  ;;  %v712_v9 = vpack.c.bf16 %v217_v6, %v215_v5  ;;  %v219_v11 = vld [vmem:[#allocation3 + $0x180] sm:$0xff] }
  0x35   :  { %693 = vmatpush1.bf16.msra.mxu0 %v692_v20  ;;  %751 = vmatprep.subr.bf16.mxu1 %v750_v35  ;;  %v714_v10 = vpack.c.bf16 %v222_v8, %v220_v7  ;;  %v221_v12 = vld [vmem:[#allocation3 + $0x190] sm:$0xff]  ;;  %v224_v13 = vld [vmem:[#allocation3 + $0x1a8] sm:$0xff]  ;;  %v226_v14 = vld [vmem:[#allocation3 + $0x1b8] sm:$0xff] }
  0x36   :  { %695 = vmatprep.subr.bf16.mxu0 %v694_v26  ;;  %v716_v15 = vpack.c.bf16 %v221_v12, %v219_v11  ;;  %v718_v16 = vpack.c.bf16 %v226_v14, %v224_v13  ;;  %v223_v17 = vld [vmem:[#allocation3 + $0x1a0] sm:$0xff]  ;;  %v225_v18 = vld [vmem:[#allocation3 + $0x1b0] sm:$0xff]  ;;  %v228_v19 = vld [vmem:[#allocation3 + $0x1c8] sm:$0xff] }
  0x37   :  { %v230_v20 = vld [vmem:[#allocation3 + $0x1d8] sm:$0xff]  ;;  %v720_v22 = vpack.c.bf16 %v225_v18, %v223_v17  ;;  %v227_v24 = vld [vmem:[#allocation3 + $0x1c0] sm:$0xff]  ;;  %v229_v25 = vld [vmem:[#allocation3 + $0x1d0] sm:$0xff] }
  0x38   :  { %753 = vmatpush1.bf16.msra.mxu1 %v752_v44  ;;  %v722_v23 = vpack.c.bf16 %v230_v20, %v228_v19  ;;  %v232_v26 = vld [vmem:[#allocation3 + $0x1e8] sm:$0xff]  ;;  %v234_v27 = vld [vmem:[#allocation3 + $0x1f8] sm:$0xff]  ;;  %v724_v28 = vpack.c.bf16 %v229_v25, %v227_v24  ;;  %v231_v30 = vld [vmem:[#allocation3 + $0x1e0] sm:$0xff]  ;;  %v839_v44 = vmov 1.0  }
  0x39   :  { %697 = vmatpush1.bf16.msra.mxu0 %v696_v33  ;;  %755 = vmatprep.subr.bf16.mxu1 %v754_v47  ;;  %v726_v29 = vpack.c.bf16 %v234_v27, %v232_v26  ;;  %v233_v31 = vld [vmem:[#allocation3 + $0x1f0] sm:$0xff]  ;;  %v33_v33 = vlaneseq  ;;  %v490_v51 = vld [vmem:[%s1085_s2 + $0x88] sm:$0xff]  ;;  %v473_v53 = vld [vmem:[%s1085_s2] sm:$0xff] }
  0x3a   :  { %699 = vmatprep.subr.bf16.mxu0 %v698_v38  ;;  %v728_v32 = vpack.c.bf16 %v233_v31, %v231_v30  ;;  %v474_v54 = vld [vmem:[%s1085_s2 + $0x8] sm:$0xff]  ;;  %v475_v59 = vld [vmem:[%s1085_s2 + $0x10] sm:$0xff]  ;;  %v476_v60 = vld [vmem:[%s1085_s2 + $0x18] sm:$0xff] }
  0x3b   :  { %v917_v34 = vand.u32 127, %v33_v33  ;;  %v764_v55 = vpack.c.bf16 %v474_v54, %v473_v53  ;;  %v493_v62 = vld [vmem:[%s1085_s2 + $0xa0] sm:$0xff]  ;;  %v494_v63 = vld [vmem:[%s1085_s2 + $0xa8] sm:$0xff]  ;;  %v496_v5 = vld [vmem:[%s1085_s2 + $0xb8] sm:$0xff] }
  0x3c   :  { %757 = vmatpush1.bf16.msra.mxu1 %v756_v56  ;;  %v491_v56 = vld [vmem:[%s1085_s2 + $0x90] sm:$0xff]  ;;  %v770_v0 = vpack.c.bf16 %v494_v63, %v493_v62  ;;  %v477_v1 = vld [vmem:[%s1085_s2 + $0x20] sm:$0xff]  ;;  %v480_v8 = vld [vmem:[%s1085_s2 + $0x38] sm:$0xff] }
  0x3d   :  { %701 = vmatpush1.bf16.msra.mxu0 %v700_v45  ;;  %759 = vmatprep.subr.bf16.mxu1 %v758_v58  ;;  %v920_v37 = vadd.s32 128, %v917_v34  ;;  %v923_v38 = vadd.s32 256, %v917_v34  ;;  %v479_v7 = vld [vmem:[%s1085_s2 + $0x30] sm:$0xff]  ;;  %v498_v11 = vld [vmem:[%s1085_s2 + $0xc8] sm:$0xff]  ;;  %v481_v13 = vld [vmem:[%s1085_s2 + $0x40] sm:$0xff] }
  0x3e   :  { %703 = vmatprep.subr.bf16.mxu0 %v702_v50  ;;  %v482_v14 = vld [vmem:[%s1085_s2 + $0x48] sm:$0xff]  ;;  %v500_v17 = vld [vmem:[%s1085_s2 + $0xd8] sm:$0xff]  ;;  %v483_v19 = vld [vmem:[%s1085_s2 + $0x50] sm:$0xff] }
  0x3f   :  { %v484_v20 = vld [vmem:[%s1085_s2 + $0x58] sm:$0xff]  ;;  %v502_v24 = vld [vmem:[%s1085_s2 + $0xe8] sm:$0xff]  ;;  %v485_v26 = vld [vmem:[%s1085_s2 + $0x60] sm:$0xff] }
  0x40   :  { %761 = vmatpush1.bf16.msra.mxu1 %v760_v2  ;;  %v478_v2 = vld [vmem:[%s1085_s2 + $0x28] sm:$0xff]  ;;  %v504_v30 = vld [vmem:[%s1085_s2 + $0xf8] sm:$0xff]  ;;  %v487_v31 = vld [vmem:[%s1085_s2 + $0x70] sm:$0xff] }
  0x41   :  { %705 = vmatpush1.bf16.msra.mxu0 %v704_v57  ;;  %v492_v57 = vld [vmem:[%s1085_s2 + $0x98] sm:$0xff]  ;;  %v486_v27 = vld [vmem:[%s1085_s2 + $0x68] sm:$0xff] }
  0x42   :  { %707 = vmatprep.subr.bf16.mxu0 %v706_v61  ;;  %v766_v58 = vpack.c.bf16 %v492_v57, %v491_v56  ;;  %v768_v61 = vpack.c.bf16 %v476_v60, %v475_v59  ;;  %v488_v33 = vld [vmem:[%s1085_s2 + $0x78] sm:$0xff] }
  0x45   :  { %709 = vmatpush1.bf16.msra.mxu0 %v708_v3  ;;  %v772_v3 = vpack.c.bf16 %v478_v2, %v477_v1 }
  0x46   :  { %711 = vmatprep.subr.bf16.mxu0 %v710_v4  ;;  %v495_v4 = vld [vmem:[%s1085_s2 + $0xb0] sm:$0xff] }
  0x47   :  { %v774_v6 = vpack.c.bf16 %v496_v5, %v495_v4 }
  0x49   :  { %713 = vmatpush1.bf16.msra.mxu0 %v712_v9  ;;  %v776_v9 = vpack.c.bf16 %v480_v8, %v479_v7 }
  0x4a   :  { %715 = vmatprep.subr.bf16.mxu0 %v714_v10  ;;  %v497_v10 = vld [vmem:[%s1085_s2 + $0xc0] sm:$0xff] }
  0x4b   :  { %v778_v12 = vpack.c.bf16 %v498_v11, %v497_v10 }
  0x4d   :  { %717 = vmatpush1.bf16.msra.mxu0 %v716_v15  ;;  %v780_v15 = vpack.c.bf16 %v482_v14, %v481_v13 }
  0x4e   :  { %719 = vmatprep.subr.bf16.mxu0 %v718_v16  ;;  %v499_v16 = vld [vmem:[%s1085_s2 + $0xd0] sm:$0xff] }
  0x4f   :  { %v782_v18 = vpack.c.bf16 %v500_v17, %v499_v16 }
  0x51   :  { %721 = vmatpush1.bf16.msra.mxu0 %v720_v22  ;;  %v784_v22 = vpack.c.bf16 %v484_v20, %v483_v19 }
  0x52   :  { %723 = vmatprep.subr.bf16.mxu0 %v722_v23  ;;  %v501_v23 = vld [vmem:[%s1085_s2 + $0xe0] sm:$0xff] }
  0x53   :  { %v786_v25 = vpack.c.bf16 %v502_v24, %v501_v23 }
  0x55   :  { %725 = vmatpush1.bf16.msra.mxu0 %v724_v28  ;;  %v788_v28 = vpack.c.bf16 %v486_v27, %v485_v26  ;;  %v630_v26 = vld [vmem:[#allocation2] ss:$0 sm:$0xff] }
  0x56   :  { %727 = vmatprep.subr.bf16.mxu0 %v726_v29  ;;  %v503_v29 = vld [vmem:[%s1085_s2 + $0xf0] sm:$0xff] }
  0x59   :  { %729 = vmatpush1.bf16.msra.mxu0 %v728_v32  ;;  %v790_v32 = vpack.c.bf16 %v504_v30, %v503_v29 }
  0x96   :  { %v113_v35 = vpop.permute.xlu1 %112  ;;  %v43_v36 = vpop.permute.xlu0 %42 }
  0x97   :  { %vm53_vm0 = vcmp.eq.s32.totalorder %v917_v34, %v43_v36  ;;  %vm54_vm3 = vcmp.eq.s32.totalorder %v920_v37, %v43_v36  ;;  %vm124_vm7 = vcmp.eq.s32.totalorder %v920_v37, %v113_v35  ;;  %vm55_vm8 = vcmp.eq.s32.totalorder %v923_v38, %v43_v36 }
  0x98   :  { %vm125_vm10 = vcmp.eq.s32.totalorder %v923_v38, %v113_v35  ;;  %vm123_vm12 = vcmp.eq.s32.totalorder %v917_v34, %v113_v35 }
  0x9a   :  { %v46_v39 = vpop.permute.xlu1 %45  ;;  %v72_v40 = vpop.permute.xlu0 %71 }
  0x9b   :  { %vm82_vm1 = vcmp.eq.s32.totalorder %v917_v34, %v72_v40  ;;  %vm84_vm2 = vcmp.eq.s32.totalorder %v923_v38, %v72_v40  ;;  %vm83_vm4 = vcmp.eq.s32.totalorder %v920_v37, %v72_v40 }
  0x9c   :  { %vm930_vm5 = vmor %vm53_vm0, %vm82_vm1  ;;  %vm57_vm0 = vcmp.eq.s32.totalorder %v920_v37, %v46_v39 }
  0x9d   :  { %vm95_vm6 = vmor %vm54_vm3, %vm83_vm4 }
  0x9e   :  { %v116_v42 = vpop.permute.xlu1 %115  ;;  %vm136_vm9 = vmor %vm95_vm6, %vm124_vm7  ;;  %v75_v43 = vpop.permute.xlu0 %74  ;;  %vm58_vm6 = vcmp.eq.s32.totalorder %v923_v38, %v46_v39 }
  0x9f   :  { %618 = vmatprep.mubr.msk.f32.mxu0 %vm136_vm9, %v839_v44  ;;  %vm96_vm11 = vmor %vm55_vm8, %vm84_vm2  ;;  %vm127_vm13 = vcmp.eq.s32.totalorder %v920_v37, %v116_v42  ;;  %vm86_vm15 = vcmp.eq.s32.totalorder %v920_v37, %v75_v43  ;;  %vm87_vm1 = vcmp.eq.s32.totalorder %v923_v38, %v75_v43  ;;  %vm128_vm4 = vcmp.eq.s32.totalorder %v923_v38, %v116_v42 }
  0xa0   :  { %vm137_vm14 = vmor %vm96_vm11, %vm125_vm10  ;;  %vm85_vm7 = vcmp.eq.s32.totalorder %v917_v34, %v75_v43  ;;  %vm126_vm9 = vcmp.eq.s32.totalorder %v917_v34, %v116_v42  ;;  %vm56_vm10 = vcmp.eq.s32.totalorder %v917_v34, %v46_v39 }
  0xa1   :  { %626 = vmatmul.mubr.msk.f32.vlgmr.msra.gmra.mrb[0].mxu1 %vm137_vm14, %v839_v44  ;;  %vm135_vm3 = vmor %vm930_vm5, %vm123_vm12 }
  0xa2   :  { %619 = vmatmul.mubr.msk.f32.vlgmr.msra.gmra.mrb[0].mxu0 %vm135_vm3, %v839_v44  ;;  %426 = vmatprep.mubr.f32.mxu1 %v838_v21  ;;  %v78_v45 = vpop.permute.xlu1 %77  ;;  %vm98_vm2 = vmor %vm57_vm0, %vm86_vm15  ;;  %v49_v46 = vpop.permute.xlu0 %48 }
  0xa3   :  { %vm139_vm8 = vmor %vm98_vm2, %vm127_vm13  ;;  %vm89_vm11 = vcmp.eq.s32.totalorder %v920_v37, %v78_v45  ;;  %vm60_vm14 = vcmp.eq.s32.totalorder %v920_v37, %v49_v46  ;;  %vm90_vm0 = vcmp.eq.s32.totalorder %v923_v38, %v78_v45  ;;  %vm61_vm13 = vcmp.eq.s32.totalorder %v923_v38, %v49_v46 }
  0xa4   :  { %620 = vmatprep.mubr.msk.f32.mxu0 %vm139_vm8, %v839_v44  ;;  %vm99_vm5 = vmor %vm58_vm6, %vm87_vm1  ;;  %vm88_vm6 = vcmp.eq.s32.totalorder %v917_v34, %v78_v45 }
  0xa5   :  { %vm140_vm12 = vmor %vm99_vm5, %vm128_vm4 }
  0xa6   :  { %627 = vmatmul.mubr.msk.f32.gmra.mrb[2].mxu1 %vm140_vm12, %v839_v44  ;;  %vm97_vm15 = vmor %vm56_vm10, %vm85_vm7  ;;  %v52_v47 = vpop.permute.xlu1 %51  ;;  %v119_v48 = vpop.permute.xlu0 %118  ;;  %vm59_vm7 = vcmp.eq.s32.totalorder %v917_v34, %v49_v46 }
  0xa7   :  { %vm138_vm3 = vmor %vm97_vm15, %vm126_vm9  ;;  %432 = vmatprep.mubr.f32.mxu1 %v838_v21  ;;  %vm130_vm1 = vcmp.eq.s32.totalorder %v920_v37, %v119_v48  ;;  %vm131_vm4 = vcmp.eq.s32.totalorder %v923_v38, %v119_v48  ;;  %vm129_vm5 = vcmp.eq.s32.totalorder %v917_v34, %v119_v48 }
  0xa8   :  { %621 = vmatmul.mubr.msk.f32.gmra.mrb[2].mxu0 %vm138_vm3, %v839_v44  ;;  %vm101_vm2 = vmor %vm60_vm14, %vm89_vm11  ;;  %vm62_vm14 = vcmp.eq.s32.totalorder %v917_v34, %v52_v47 }
  0xa9   :  { %vm142_vm8 = vmor %vm101_vm2, %vm130_vm1  ;;  %vm63_vm2 = vcmp.eq.s32.totalorder %v920_v37, %v52_v47 }
  0xaa   :  { %622 = vmatprep.mubr.msk.f32.mxu0 %vm142_vm8, %v839_v44  ;;  %vm102_vm10 = vmor %vm61_vm13, %vm90_vm0  ;;  %v81_v49 = vpop.permute.xlu0 %80  ;;  %v122_v50 = vpop.permute.xlu1 %121 }
  0xab   :  { %vm143_vm9 = vmor %vm102_vm10, %vm131_vm4  ;;  %vm91_vm12 = vcmp.eq.s32.totalorder %v917_v34, %v81_v49  ;;  %vm92_vm11 = vcmp.eq.s32.totalorder %v920_v37, %v81_v49  ;;  %vm93_vm1 = vcmp.eq.s32.totalorder %v923_v38, %v81_v49  ;;  %vm133_vm0 = vcmp.eq.s32.totalorder %v920_v37, %v122_v50 }
  0xac   :  { %628 = vmatmul.mubr.msk.f32.gmra.mrb[4].mxu1 %vm143_vm9, %v839_v44  ;;  %vm100_vm15 = vmor %vm59_vm7, %vm88_vm6  ;;  %vm64_vm4 = vcmp.eq.s32.totalorder %v923_v38, %v52_v47  ;;  %vm134_vm6 = vcmp.eq.s32.totalorder %v923_v38, %v122_v50  ;;  %vm132_vm8 = vcmp.eq.s32.totalorder %v917_v34, %v122_v50  ;;  %v792_v34 = vpack.c.bf16 %v488_v33, %v487_v31 }
  0xad   :  { %vm141_vm3 = vmor %vm100_vm15, %vm129_vm5  ;;  %438 = vmatprep.mubr.f32.mxu1 %v838_v21  ;;  %v489_v21 = vld [vmem:[%s1085_s2 + $0x80] sm:$0xff] }
  0xae   :  { %623 = vmatmul.mubr.msk.f32.gmra.mrb[4].mxu0 %vm141_vm3, %v839_v44  ;;  %vm103_vm13 = vmor %vm62_vm14, %vm91_vm12  ;;  %v762_v52 = vpack.c.bf16 %v490_v51, %v489_v21  ;;  %vm516_vm12 = vcmask 1041409  }
  0xaf   :  { %vm104_vm7 = vmor %vm63_vm2, %vm92_vm11  ;;  %vm591_vm11 = vcmask 1024  }
  0xb0   :  { %vm105_vm10 = vmor %vm64_vm4, %vm93_vm1  ;;  %763 = vmatprep.subr.bf16.mxu1 %v762_v52 }
  0xb1   :  { %vm145_vm5 = vmor %vm104_vm7, %vm133_vm0  ;;  %765 = vmatpush3.bf16.msra.mxu1 %v764_v55 }
  0xb2   :  { %624 = vmatprep.mubr.msk.f32.mxu0 %vm145_vm5, %v839_v44  ;;  %vm146_vm9 = vmor %vm105_vm10, %vm134_vm6  ;;  %767 = vmatprep.subr.bf16.mxu1 %v766_v58 }
  0xb3   :  { %629 = vmatmul.mubr.msk.f32.gmra.mrb[6].mxu1 %vm146_vm9, %v839_v44  ;;  %vm144_vm15 = vmor %vm103_vm13, %vm132_vm8 }
  0xb4   :  { %625 = vmatmul.mubr.msk.f32.gmra.mrb[6].mxu0 %vm144_vm15, %v839_v44 }
  0xb5   :  { %769 = vmatpush3.bf16.msra.mxu1 %v768_v61 }
  0xb6   :  { %771 = vmatprep.subr.bf16.mxu1 %v770_v0 }
  0xb9   :  { %773 = vmatpush3.bf16.msra.mxu1 %v772_v3 }
  0xba   :  { %775 = vmatprep.subr.bf16.mxu1 %v774_v6 }
  0xbd   :  { %777 = vmatpush3.bf16.msra.mxu1 %v776_v9 }
  0xbe   :  { %779 = vmatprep.subr.bf16.mxu1 %v778_v12 }
  0xc1   :  { %781 = vmatpush3.bf16.msra.mxu1 %v780_v15 }
  0xc2   :  { %783 = vmatprep.subr.bf16.mxu1 %v782_v18 }
  0xc5   :  { %785 = vmatpush3.bf16.msra.mxu1 %v784_v22 }
  0xc6   :  { %787 = vmatprep.subr.bf16.mxu1 %v786_v25 }
  0xc9   :  { %789 = vmatpush3.bf16.msra.mxu1 %v788_v28 }
  0xca   :  { %791 = vmatprep.subr.bf16.mxu1 %v790_v32 }
  0xcd   :  { %793 = vmatpush3.bf16.msra.mxu1 %v792_v34 }
 0x174   :  { %v422_v35 = vpop.f32.mrb[0].mxu1 }
 0x175   :  { %v333_v36 = vpop.f32.mrb[0].mxu0  ;;  %v424_v37 = vpop.f32.mrb[1].mxu1 }
 0x176   :  { %v423_v38 = vadd.f32 %v422_v35, %v333_v36  ;;  %v335_v39 = vpop.f32.mrb[1].mxu0 }
 0x177   :  { %v425_v40 = vadd.f32 %v424_v37, %v335_v39 }
 0x179   :  { %v428_v41 = vpop.f32.mrb[2].mxu1 }
 0x17a   :  { %v430_v42 = vpop.f32.mrb[3].mxu1 }
 0x17b   :  { %v339_v43 = vpop.f32.mrb[2].mxu0 }
 0x17c   :  { %v429_v44 = vadd.f32 %v428_v41, %v339_v43  ;;  %v341_v45 = vpop.f32.mrb[3].mxu0 }
 0x17d   :  { %v431_v46 = vadd.f32 %v430_v42, %v341_v45 }
 0x17e   :  { %v445_v47 = vmax.f32 %v423_v38, %v429_v44 }
 0x17f   :  { %v452_v48 = vmax.f32 %v425_v40, %v431_v46  ;;  %v434_v49 = vpop.f32.mrb[4].mxu1 }
 0x180   :  { %v436_v50 = vpop.f32.mrb[5].mxu1  ;;  %v446_v51 = vrot.slane %v445_v47, 4 }
 0x181   :  { %v345_v21 = vpop.f32.mrb[4].mxu0  ;;  %v453_v54 = vrot.slane %v452_v48, 4 }
 0x182   :  { %v435_v52 = vadd.f32 %v434_v49, %v345_v21  ;;  %v347_v53 = vpop.f32.mrb[5].mxu0  ;;  %v447_v56 = vmax.f32 %v445_v47, %v446_v51 }
 0x183   :  { %v437_v55 = vadd.f32 %v436_v50, %v347_v53  ;;  %v454_v58 = vmax.f32 %v452_v48, %v453_v54 }
 0x184   :  { %v448_v0 = vrot.slane %v447_v56, 2 }
 0x185   :  { %v455_v2 = vrot.slane %v454_v58, 2 }
 0x186   :  { %v440_v57 = vpop.f32.mrb[6].mxu1  ;;  %v449_v6 = vmax.f32 %v447_v56, %v448_v0 }
 0x187   :  { %v351_v59 = vpop.f32.mrb[6].mxu0  ;;  %v442_v60 = vpop.f32.mrb[7].mxu1  ;;  %v456_v8 = vmax.f32 %v454_v58, %v455_v2 }
 0x188   :  { %v441_v61 = vadd.f32 %v440_v57, %v351_v59  ;;  %v353_v62 = vpop.f32.mrb[7].mxu0  ;;  %v450_v12 = vrot.slane %v449_v6, 1 }
 0x189   :  { %v443_v63 = vadd.f32 %v442_v60, %v353_v62  ;;  %v457_v15 = vrot.slane %v456_v8, 1 }
 0x18a   :  { %v459_v1 = vmax.f32 %v435_v52, %v441_v61  ;;  %v451_v18 = vmax.f32 %v449_v6, %v450_v12 }
 0x18b   :  { %v466_v3 = vmax.f32 %v437_v55, %v443_v63  ;;  %v458_v20 = vmax.f32 %v456_v8, %v457_v15 }
 0x18c   :  { %v460_v4 = vrot.slane %v459_v1, 4 }
 0x18d   :  { %v467_v5 = vrot.slane %v466_v3, 4 }
 0x18e   :  { %v461_v7 = vmax.f32 %v459_v1, %v460_v4 }
 0x18f   :  { %v468_v9 = vmax.f32 %v466_v3, %v467_v5 }
 0x190   :  { %v462_v10 = vrot.slane %v461_v7, 2 }
 0x191   :  { %v469_v11 = vrot.slane %v468_v9, 2 }
 0x192   :  { %v463_v13 = vmax.f32 %v461_v7, %v462_v10 }
 0x193   :  { %v470_v14 = vmax.f32 %v468_v9, %v469_v11 }
 0x194   :  { %v464_v16 = vrot.slane %v463_v13, 1 }
 0x195   :  { %v471_v17 = vrot.slane %v470_v14, 1 }
 0x196   :  { %v465_v19 = vmax.f32 %v463_v13, %v464_v16 }
 0x197   :  { %v472_v22 = vmax.f32 %v470_v14, %v471_v17 }
 0x198   :  { %v517_v23 = vsel %vm516_vm12, %v465_v19, %v451_v18 }
 0x199   :  { %v518_v24 = vsel %vm516_vm12, %v472_v22, %v458_v20 }
 0x19a   :  { %585 = vmatprep.mubr.f32.mxu1 %v518_v24 }
 0x19b   :  { %586 = vmatmul.mubr.f32.vlgmr.msra.gmra.mrb[8].mxu1 %v517_v23 }
 0x26e   :  { %v663_v25 = vpop.f32.mrb[8].mxu1 }
 0x26f   :  { %v664_v27 = vpop.f32.mrb[9].mxu1 }
 0x270   :  { %v665_v28 = vadd.f32 %v664_v27, %v663_v25 }
 0x272   :  { %v588_v29 = vadd.f32 %v665_v28, %v630_v26 }
 0x274   :  { %592 = vst.msk [vmem:[%s1087_s4] sm:$0x3] %vm591_vm11, %v588_v29 }
 0x275   :  { %597 = vsyncpa [#allocation4], 1 }

</bundles_post_ra>
